<compile_context>
chip_gen: v5e
topology: v5e:2x2
jax: 0.10.0
libtpu: 0.0.40
codegen_flags: <defaults>
</compile_context>

<pallas_src>
import functools

import jax
import jax.numpy as jnp
from jax import lax
from jax.experimental import pallas as pl
from jax.experimental.pallas import tpu as pltpu


def fused_rnn_witi_kernel(x_ref, h0_ref, wih_ref, whh_ref, b_ref,
                          wlin_ref, blin_ref, out_ref, state_ref, y_scr,
                          *, is_iti):
    """Fused tanh-RNN + linear head + masked 3-way softmax.

    x_ref:    (B, T, D)    batch-first inputs (consumed as-is, no transpose)
    h0_ref:   (1, B, H)    initial hidden state
    wih_ref:  (D, H)       input->hidden weight (transposed for x @ W)
    whh_ref:  (H, H)       hidden->hidden weight (transposed for h @ W)
    b_ref:    (1, H)       b_ih + b_hh (folded once)
    wlin_ref: (H, DOUT)    head weight (transposed)
    blin_ref: (1, DOUT)    head bias (bias[0] = bias_init)
    out_ref:  (B*T, DOUT)  [softmax(masked logits[:, :3]) | logits[:, 3:]]
    state_ref:(1, B, H)    final hidden state
    y_scr:    (B, T, H)    VMEM scratch holding all hidden states (batch-major)
    """
    B, T, D = x_ref.shape
    H = y_scr.shape[-1]

    # (1) Hoisted input projection with the bias folded in: one matmul for all
    #     (b, t) instead of T tiny matmuls + T bias broadcasts on the serial chain.
    xw = (jnp.dot(x_ref[...].reshape(B * T, D), wih_ref[...],
                  preferred_element_type=jnp.float32)
          + b_ref[...]).reshape(B, T, H)                    # rows ordered b*T + t

    # (2) Recurrence, fully unrolled (T small & static). Critical path per step
    #     is a single (B, H) @ (H, H) matmul + tanh.
    whh = whh_ref[...]
    h = h0_ref[0]                                           # (B, H)
    for t in range(T):
        h = jnp.tanh(xw[:, t, :]
                     + jnp.dot(h, whh, preferred_element_type=jnp.float32))
        y_scr[:, t, :] = h                                  # batch-major placement
    state_ref[0] = h

    # (3) Linear head: ONE matmul over all B*T rows (== Y.reshape(-1, H)).
    y_flat = y_scr[...].reshape(B * T, H)
    logits = (jnp.dot(y_flat, wlin_ref[...], preferred_element_type=jnp.float32)
              + blin_ref[...])                              # (B*T, DOUT)

    # (4) Masked 3-way softmax (PyTorch sets the masked logits to exactly -1000.0).
    y2 = logits[:, :3]
    col = lax.broadcasted_iota(jnp.int32, y2.shape, 1)
    if is_iti:
        y2 = jnp.where(col < 2, jnp.float32(-1000.0), y2)
    else:
        y2 = jnp.where(col == 2, jnp.float32(-1000.0), y2)
    m = jnp.max(y2, axis=1, keepdims=True)
    e = jnp.exp(y2 - m)
    # NOTE: pl.reciprocal(..., approx=True) would shave a VPU divide, but exact
    # mode is kept so the 1e-5 parity check against the XLA reference holds.
    policy = e * pl.reciprocal(jnp.sum(e, axis=1, keepdims=True))

    # (5) Single lane-contiguous output block (one output DMA stream):
    #     columns [0:3] = policy, [3] = value, [4:] = pred_supervised.
    out_ref[:, :3] = policy
    out_ref[:, 3:] = logits[:, 3:]


def rnn_witi_forward(x_btd, h0_1bh, wih_t, whh_t, b_1h, wlin_t, blin_1d,
                     is_iti=False):
    """Mirrors RNNModel_wITI.forward with a single fused pallas_call."""
    B, T, D = x_btd.shape
    H = wih_t.shape[-1]
    DOUT = wlin_t.shape[-1]          # must be >= 4 (module default: 7)

    out, state = pl.pallas_call(
        functools.partial(fused_rnn_witi_kernel, is_iti=is_iti),
        out_shape=(jax.ShapeDtypeStruct((B * T, DOUT), jnp.float32),
                   jax.ShapeDtypeStruct((1, B, H), jnp.float32)),
        grid=(1,),
        in_specs=[
            pl.BlockSpec((B, T, D), lambda i: (0, 0, 0)),
            pl.BlockSpec((1, B, H), lambda i: (0, 0, 0)),
            pl.BlockSpec((D, H), lambda i: (0, 0)),
            pl.BlockSpec((H, H), lambda i: (0, 0)),
            pl.BlockSpec((1, H), lambda i: (0, 0)),
            pl.BlockSpec((H, DOUT), lambda i: (0, 0)),
            pl.BlockSpec((1, DOUT), lambda i: (0, 0)),
        ],
        out_specs=(pl.BlockSpec((B * T, DOUT), lambda i: (0, 0)),
                   pl.BlockSpec((1, B, H), lambda i: (0, 0, 0))),
        scratch_shapes=[pltpu.VMEM((B, T, H), jnp.float32)],
        compiler_params=pltpu.CompilerParams(
            dimension_semantics=("arbitrary",)),
    )(x_btd, h0_1bh, wih_t, whh_t, b_1h, wlin_t, blin_1d)

    return {"policy": out[:, :3],
            "value": out[:, 3],
            "state": state,
            "activations": None,
            "pred_supervised": out[:, 4:]}


def _reference_forward(x_btd, h0_1bh, wih_t, whh_t, b_1h, wlin_t, blin_1d,
                       is_iti=False):
    """Pure-JAX reference for correctness checking."""
    B, T, D = x_btd.shape
    H = wih_t.shape[-1]
    h0 = h0_1bh.reshape(B, H)

    def step(h, x_t):
        h_new = jnp.tanh(x_t @ wih_t + h @ whh_t + b_1h[0])
        return h_new, h_new

    h_last, ys = lax.scan(step, h0, jnp.transpose(x_btd, (1, 0, 2)))
    y_flat = jnp.transpose(ys, (1, 0, 2)).reshape(B * T, H)
    logits = y_flat @ wlin_t + blin_1d[0]
    y2 = logits[:, :3]
    if is_iti:
        y2 = y2.at[:, :2].set(-1000.0)
    else:
        y2 = y2.at[:, 2].set(-1000.0)
    policy = jax.nn.softmax(y2, axis=1)
    return policy, logits[:, 3], logits[:, 4:], h_last.reshape(1, B, H)


if __name__ == "__main__":
    # Shapes consistent with the module defaults: din=4, dout=7, H=32, bias_init=6.0.
    B, T, D, H, DOUT = 2, 8, 4, 32, 7
    BIAS_INIT = 6.0

    key = jax.random.PRNGKey(0)
    ks = jax.random.split(key, 8)
    scale = 1.0 / jnp.sqrt(jnp.float32(H))

    # Deterministic synthetic parameters (stored already transposed for x @ W).
    wih_t = jax.random.uniform(ks[0], (D, H), jnp.float32, -scale, scale)
    whh_t = jax.random.uniform(ks[1], (H, H), jnp.float32, -scale, scale)
    b_ih = jax.random.uniform(ks[2], (H,), jnp.float32, -scale, scale)
    b_hh = jax.random.uniform(ks[3], (H,), jnp.float32, -scale, scale)
    b_1h = (b_ih + b_hh).reshape(1, H)
    wlin_t = jax.random.uniform(ks[4], (H, DOUT), jnp.float32, -scale, scale)
    blin = jax.random.uniform(ks[5], (DOUT,), jnp.float32, -scale, scale)
    blin = blin.at[0].set(BIAS_INIT)                 # bias[0] = bias_init (6.0)
    blin_1d = blin.reshape(1, DOUT)

    # begin_state: uniform(0, 1), shape (num_layers*dirs, B, H); inputs (B, T, D).
    h0_1bh = jax.random.uniform(ks[6], (1, B, H), jnp.float32)
    x = jax.random.normal(ks[7], (B, T, D), jnp.float32)

    for iti in (False, True):
        out = rnn_witi_forward(x, h0_1bh, wih_t, whh_t, b_1h, wlin_t, blin_1d,
                               is_iti=iti)
        jax.block_until_ready(out["policy"])
        jax.block_until_ready(out["value"])
        jax.block_until_ready(out["pred_supervised"])
        jax.block_until_ready(out["state"])

        ref_policy, ref_value, ref_sup, ref_state = _reference_forward(
            x, h0_1bh, wih_t, whh_t, b_1h, wlin_t, blin_1d, is_iti=iti)

        assert out["policy"].shape == (B * T, 3)
        assert out["value"].shape == (B * T,)
        assert out["pred_supervised"].shape == (B * T, DOUT - 4)
        assert out["state"].shape == (1, B, H)
        assert jnp.allclose(out["policy"], ref_policy, rtol=1e-5, atol=1e-5)
        assert jnp.allclose(out["value"], ref_value, rtol=1e-5, atol=1e-5)
        assert jnp.allclose(out["pred_supervised"], ref_sup, rtol=1e-5, atol=1e-5)
        assert jnp.allclose(out["state"], ref_state, rtol=1e-5, atol=1e-5)

    print("KERNEL_OK")
</pallas_src>

<mosaic_0001>
module attributes {stable_mosaic.version = 11 : i64} {
  func.func @fused_rnn_witi_kernel(%arg0: i32, %arg1: memref<2x8x4xf32, #tpu.memory_space<vmem>>, %arg2: memref<1x2x32xf32, #tpu.memory_space<vmem>>, %arg3: memref<4x32xf32, #tpu.memory_space<vmem>>, %arg4: memref<32x32xf32, #tpu.memory_space<vmem>>, %arg5: memref<1x32xf32, #tpu.memory_space<vmem>>, %arg6: memref<32x7xf32, #tpu.memory_space<vmem>>, %arg7: memref<1x7xf32, #tpu.memory_space<vmem>>, %arg8: memref<16x7xf32, #tpu.memory_space<vmem>>, %arg9: memref<1x2x32xf32, #tpu.memory_space<vmem>>, %arg10: memref<2x8x32xf32, #tpu.memory_space<vmem>>) attributes {dimension_semantics = [#tpu.dimension_semantics<arbitrary>], iteration_bounds = array<i64: 1>, scalar_prefetch = 0 : i64, scratch_operands = 1 : i64, tpu.core_type = #tpu.core_type<tc>, window_params = [{pipeline_mode = #tpu.pipeline_mode<synchronous>, transform_indices = @transform_0, window_bounds = array<i64: 2, 8, 4>}, {pipeline_mode = #tpu.pipeline_mode<synchronous>, transform_indices = @transform_1, window_bounds = array<i64: 1, 2, 32>}, {pipeline_mode = #tpu.pipeline_mode<synchronous>, transform_indices = @transform_2, window_bounds = array<i64: 4, 32>}, {pipeline_mode = #tpu.pipeline_mode<synchronous>, transform_indices = @transform_3, window_bounds = array<i64: 32, 32>}, {pipeline_mode = #tpu.pipeline_mode<synchronous>, transform_indices = @transform_4, window_bounds = array<i64: 1, 32>}, {pipeline_mode = #tpu.pipeline_mode<synchronous>, transform_indices = @transform_5, window_bounds = array<i64: 32, 7>}, {pipeline_mode = #tpu.pipeline_mode<synchronous>, transform_indices = @transform_6, window_bounds = array<i64: 1, 7>}, {pipeline_mode = #tpu.pipeline_mode<synchronous>, transform_indices = @transform_7, window_bounds = array<i64: 16, 7>}, {pipeline_mode = #tpu.pipeline_mode<synchronous>, transform_indices = @transform_8, window_bounds = array<i64: 1, 2, 32>}]} {
    %c0 = arith.constant 0 : index
    %c0_0 = arith.constant 0 : index
    %c0_1 = arith.constant 0 : index
    %0 = vector.load %arg1[%c0, %c0_0, %c0_1] : memref<2x8x4xf32, #tpu.memory_space<vmem>>, vector<2x8x4xf32>
    %1 = vector.shape_cast %0 : vector<2x8x4xf32> to vector<16x4xf32>
    %c0_2 = arith.constant 0 : index
    %c0_3 = arith.constant 0 : index
    %2 = vector.load %arg3[%c0_2, %c0_3] : memref<4x32xf32, #tpu.memory_space<vmem>>, vector<4x32xf32>
    %cst = arith.constant dense<0.000000e+00> : vector<16x32xf32>
    %3 = tpu.matmul %1, %2, %cst {dimension_numbers = #tpu.dot_dimension_numbers<[1], [0], [0], [1], [0, 0, 1, 1], [], []>} : vector<16x4xf32>, vector<4x32xf32>, vector<16x32xf32> -> vector<16x32xf32>
    %c0_4 = arith.constant 0 : index
    %c0_5 = arith.constant 0 : index
    %4 = vector.load %arg5[%c0_4, %c0_5] : memref<1x32xf32, #tpu.memory_space<vmem>>, vector<1x32xf32>
    %5 = vector.broadcast %4 : vector<1x32xf32> to vector<16x32xf32>
    %6 = arith.addf %3, %5 : vector<16x32xf32>
    %7 = vector.shape_cast %6 : vector<16x32xf32> to vector<2x8x32xf32>
    %c0_6 = arith.constant 0 : index
    %c0_7 = arith.constant 0 : index
    %8 = vector.load %arg4[%c0_6, %c0_7] : memref<32x32xf32, #tpu.memory_space<vmem>>, vector<32x32xf32>
    %c0_8 = arith.constant 0 : index
    %c0_9 = arith.constant 0 : index
    %c0_10 = arith.constant 0 : index
    %9 = vector.load %arg2[%c0_8, %c0_9, %c0_10] : memref<1x2x32xf32, #tpu.memory_space<vmem>>, vector<1x2x32xf32>
    %10 = vector.shape_cast %9 : vector<1x2x32xf32> to vector<2x32xf32>
    %11 = vector.extract_strided_slice %7 {offsets = [0, 0, 0], sizes = [2, 1, 32], strides = [1, 1, 1]} : vector<2x8x32xf32> to vector<2x1x32xf32>
    %12 = vector.shape_cast %11 : vector<2x1x32xf32> to vector<2x32xf32>
    %cst_11 = arith.constant dense<0.000000e+00> : vector<2x32xf32>
    %13 = tpu.matmul %10, %8, %cst_11 {dimension_numbers = #tpu.dot_dimension_numbers<[1], [0], [0], [1], [0, 0, 1, 1], [], []>} : vector<2x32xf32>, vector<32x32xf32>, vector<2x32xf32> -> vector<2x32xf32>
    %14 = arith.addf %12, %13 : vector<2x32xf32>
    %15 = math.tanh %14 : vector<2x32xf32>
    %c0_12 = arith.constant 0 : index
    %c0_13 = arith.constant 0 : index
    %c0_14 = arith.constant 0 : index
    %16 = vector.load %arg10[%c0_12, %c0_13, %c0_14] : memref<2x8x32xf32, #tpu.memory_space<vmem>>, vector<2x1x32xf32>
    %17 = vector.shape_cast %16 : vector<2x1x32xf32> to vector<2x32xf32>
    %18 = vector.shape_cast %15 : vector<2x32xf32> to vector<2x1x32xf32>
    tpu.vector_store %arg10[%c0_12, %c0_13, %c0_14], %18 {strides = array<i32>} : memref<2x8x32xf32, #tpu.memory_space<vmem>>, vector<2x1x32xf32>,
    %19 = vector.extract_strided_slice %7 {offsets = [0, 1, 0], sizes = [2, 1, 32], strides = [1, 1, 1]} : vector<2x8x32xf32> to vector<2x1x32xf32>
    %20 = vector.shape_cast %19 : vector<2x1x32xf32> to vector<2x32xf32>
    %cst_15 = arith.constant dense<0.000000e+00> : vector<2x32xf32>
    %21 = tpu.matmul %15, %8, %cst_15 {dimension_numbers = #tpu.dot_dimension_numbers<[1], [0], [0], [1], [0, 0, 1, 1], [], []>} : vector<2x32xf32>, vector<32x32xf32>, vector<2x32xf32> -> vector<2x32xf32>
    %22 = arith.addf %20, %21 : vector<2x32xf32>
    %23 = math.tanh %22 : vector<2x32xf32>
    %c0_16 = arith.constant 0 : index
    %c1 = arith.constant 1 : index
    %c0_17 = arith.constant 0 : index
    %24 = vector.load %arg10[%c0_16, %c1, %c0_17] : memref<2x8x32xf32, #tpu.memory_space<vmem>>, vector<2x1x32xf32>
    %25 = vector.shape_cast %24 : vector<2x1x32xf32> to vector<2x32xf32>
    %26 = vector.shape_cast %23 : vector<2x32xf32> to vector<2x1x32xf32>
    tpu.vector_store %arg10[%c0_16, %c1, %c0_17], %26 {strides = array<i32>} : memref<2x8x32xf32, #tpu.memory_space<vmem>>, vector<2x1x32xf32>,
    %27 = vector.extract_strided_slice %7 {offsets = [0, 2, 0], sizes = [2, 1, 32], strides = [1, 1, 1]} : vector<2x8x32xf32> to vector<2x1x32xf32>
    %28 = vector.shape_cast %27 : vector<2x1x32xf32> to vector<2x32xf32>
    %cst_18 = arith.constant dense<0.000000e+00> : vector<2x32xf32>
    %29 = tpu.matmul %23, %8, %cst_18 {dimension_numbers = #tpu.dot_dimension_numbers<[1], [0], [0], [1], [0, 0, 1, 1], [], []>} : vector<2x32xf32>, vector<32x32xf32>, vector<2x32xf32> -> vector<2x32xf32>
    %30 = arith.addf %28, %29 : vector<2x32xf32>
    %31 = math.tanh %30 : vector<2x32xf32>
    %c0_19 = arith.constant 0 : index
    %c2 = arith.constant 2 : index
    %c0_20 = arith.constant 0 : index
    %32 = vector.load %arg10[%c0_19, %c2, %c0_20] : memref<2x8x32xf32, #tpu.memory_space<vmem>>, vector<2x1x32xf32>
    %33 = vector.shape_cast %32 : vector<2x1x32xf32> to vector<2x32xf32>
    %34 = vector.shape_cast %31 : vector<2x32xf32> to vector<2x1x32xf32>
    tpu.vector_store %arg10[%c0_19, %c2, %c0_20], %34 {strides = array<i32>} : memref<2x8x32xf32, #tpu.memory_space<vmem>>, vector<2x1x32xf32>,
    %35 = vector.extract_strided_slice %7 {offsets = [0, 3, 0], sizes = [2, 1, 32], strides = [1, 1, 1]} : vector<2x8x32xf32> to vector<2x1x32xf32>
    %36 = vector.shape_cast %35 : vector<2x1x32xf32> to vector<2x32xf32>
    %cst_21 = arith.constant dense<0.000000e+00> : vector<2x32xf32>
    %37 = tpu.matmul %31, %8, %cst_21 {dimension_numbers = #tpu.dot_dimension_numbers<[1], [0], [0], [1], [0, 0, 1, 1], [], []>} : vector<2x32xf32>, vector<32x32xf32>, vector<2x32xf32> -> vector<2x32xf32>
    %38 = arith.addf %36, %37 : vector<2x32xf32>
    %39 = math.tanh %38 : vector<2x32xf32>
    %c0_22 = arith.constant 0 : index
    %c3 = arith.constant 3 : index
    %c0_23 = arith.constant 0 : index
    %40 = vector.load %arg10[%c0_22, %c3, %c0_23] : memref<2x8x32xf32, #tpu.memory_space<vmem>>, vector<2x1x32xf32>
    %41 = vector.shape_cast %40 : vector<2x1x32xf32> to vector<2x32xf32>
    %42 = vector.shape_cast %39 : vector<2x32xf32> to vector<2x1x32xf32>
    tpu.vector_store %arg10[%c0_22, %c3, %c0_23], %42 {strides = array<i32>} : memref<2x8x32xf32, #tpu.memory_space<vmem>>, vector<2x1x32xf32>,
    %43 = vector.extract_strided_slice %7 {offsets = [0, 4, 0], sizes = [2, 1, 32], strides = [1, 1, 1]} : vector<2x8x32xf32> to vector<2x1x32xf32>
    %44 = vector.shape_cast %43 : vector<2x1x32xf32> to vector<2x32xf32>
    %cst_24 = arith.constant dense<0.000000e+00> : vector<2x32xf32>
    %45 = tpu.matmul %39, %8, %cst_24 {dimension_numbers = #tpu.dot_dimension_numbers<[1], [0], [0], [1], [0, 0, 1, 1], [], []>} : vector<2x32xf32>, vector<32x32xf32>, vector<2x32xf32> -> vector<2x32xf32>
    %46 = arith.addf %44, %45 : vector<2x32xf32>
    %47 = math.tanh %46 : vector<2x32xf32>
    %c0_25 = arith.constant 0 : index
    %c4 = arith.constant 4 : index
    %c0_26 = arith.constant 0 : index
    %48 = vector.load %arg10[%c0_25, %c4, %c0_26] : memref<2x8x32xf32, #tpu.memory_space<vmem>>, vector<2x1x32xf32>
    %49 = vector.shape_cast %48 : vector<2x1x32xf32> to vector<2x32xf32>
    %50 = vector.shape_cast %47 : vector<2x32xf32> to vector<2x1x32xf32>
    tpu.vector_store %arg10[%c0_25, %c4, %c0_26], %50 {strides = array<i32>} : memref<2x8x32xf32, #tpu.memory_space<vmem>>, vector<2x1x32xf32>,
    %51 = vector.extract_strided_slice %7 {offsets = [0, 5, 0], sizes = [2, 1, 32], strides = [1, 1, 1]} : vector<2x8x32xf32> to vector<2x1x32xf32>
    %52 = vector.shape_cast %51 : vector<2x1x32xf32> to vector<2x32xf32>
    %cst_27 = arith.constant dense<0.000000e+00> : vector<2x32xf32>
    %53 = tpu.matmul %47, %8, %cst_27 {dimension_numbers = #tpu.dot_dimension_numbers<[1], [0], [0], [1], [0, 0, 1, 1], [], []>} : vector<2x32xf32>, vector<32x32xf32>, vector<2x32xf32> -> vector<2x32xf32>
    %54 = arith.addf %52, %53 : vector<2x32xf32>
    %55 = math.tanh %54 : vector<2x32xf32>
    %c0_28 = arith.constant 0 : index
    %c5 = arith.constant 5 : index
    %c0_29 = arith.constant 0 : index
    %56 = vector.load %arg10[%c0_28, %c5, %c0_29] : memref<2x8x32xf32, #tpu.memory_space<vmem>>, vector<2x1x32xf32>
    %57 = vector.shape_cast %56 : vector<2x1x32xf32> to vector<2x32xf32>
    %58 = vector.shape_cast %55 : vector<2x32xf32> to vector<2x1x32xf32>
    tpu.vector_store %arg10[%c0_28, %c5, %c0_29], %58 {strides = array<i32>} : memref<2x8x32xf32, #tpu.memory_space<vmem>>, vector<2x1x32xf32>,
    %59 = vector.extract_strided_slice %7 {offsets = [0, 6, 0], sizes = [2, 1, 32], strides = [1, 1, 1]} : vector<2x8x32xf32> to vector<2x1x32xf32>
    %60 = vector.shape_cast %59 : vector<2x1x32xf32> to vector<2x32xf32>
    %cst_30 = arith.constant dense<0.000000e+00> : vector<2x32xf32>
    %61 = tpu.matmul %55, %8, %cst_30 {dimension_numbers = #tpu.dot_dimension_numbers<[1], [0], [0], [1], [0, 0, 1, 1], [], []>} : vector<2x32xf32>, vector<32x32xf32>, vector<2x32xf32> -> vector<2x32xf32>
    %62 = arith.addf %60, %61 : vector<2x32xf32>
    %63 = math.tanh %62 : vector<2x32xf32>
    %c0_31 = arith.constant 0 : index
    %c6 = arith.constant 6 : index
    %c0_32 = arith.constant 0 : index
    %64 = vector.load %arg10[%c0_31, %c6, %c0_32] : memref<2x8x32xf32, #tpu.memory_space<vmem>>, vector<2x1x32xf32>
    %65 = vector.shape_cast %64 : vector<2x1x32xf32> to vector<2x32xf32>
    %66 = vector.shape_cast %63 : vector<2x32xf32> to vector<2x1x32xf32>
    tpu.vector_store %arg10[%c0_31, %c6, %c0_32], %66 {strides = array<i32>} : memref<2x8x32xf32, #tpu.memory_space<vmem>>, vector<2x1x32xf32>,
    %67 = vector.extract_strided_slice %7 {offsets = [0, 7, 0], sizes = [2, 1, 32], strides = [1, 1, 1]} : vector<2x8x32xf32> to vector<2x1x32xf32>
    %68 = vector.shape_cast %67 : vector<2x1x32xf32> to vector<2x32xf32>
    %cst_33 = arith.constant dense<0.000000e+00> : vector<2x32xf32>
    %69 = tpu.matmul %63, %8, %cst_33 {dimension_numbers = #tpu.dot_dimension_numbers<[1], [0], [0], [1], [0, 0, 1, 1], [], []>} : vector<2x32xf32>, vector<32x32xf32>, vector<2x32xf32> -> vector<2x32xf32>
    %70 = arith.addf %68, %69 : vector<2x32xf32>
    %71 = math.tanh %70 : vector<2x32xf32>
    %c0_34 = arith.constant 0 : index
    %c7 = arith.constant 7 : index
    %c0_35 = arith.constant 0 : index
    %72 = vector.load %arg10[%c0_34, %c7, %c0_35] : memref<2x8x32xf32, #tpu.memory_space<vmem>>, vector<2x1x32xf32>
    %73 = vector.shape_cast %72 : vector<2x1x32xf32> to vector<2x32xf32>
    %74 = vector.shape_cast %71 : vector<2x32xf32> to vector<2x1x32xf32>
    tpu.vector_store %arg10[%c0_34, %c7, %c0_35], %74 {strides = array<i32>} : memref<2x8x32xf32, #tpu.memory_space<vmem>>, vector<2x1x32xf32>,
    %c0_36 = arith.constant 0 : index
    %c0_37 = arith.constant 0 : index
    %c0_38 = arith.constant 0 : index
    %75 = vector.load %arg9[%c0_36, %c0_37, %c0_38] : memref<1x2x32xf32, #tpu.memory_space<vmem>>, vector<1x2x32xf32>
    %76 = vector.shape_cast %75 : vector<1x2x32xf32> to vector<2x32xf32>
    %77 = vector.shape_cast %71 : vector<2x32xf32> to vector<1x2x32xf32>
    tpu.vector_store %arg9[%c0_36, %c0_37, %c0_38], %77 {strides = array<i32>} : memref<1x2x32xf32, #tpu.memory_space<vmem>>, vector<1x2x32xf32>,
    %c0_39 = arith.constant 0 : index
    %c0_40 = arith.constant 0 : index
    %c0_41 = arith.constant 0 : index
    %78 = vector.load %arg10[%c0_39, %c0_40, %c0_41] : memref<2x8x32xf32, #tpu.memory_space<vmem>>, vector<2x8x32xf32>
    %79 = vector.shape_cast %78 : vector<2x8x32xf32> to vector<16x32xf32>
    %c0_42 = arith.constant 0 : index
    %c0_43 = arith.constant 0 : index
    %80 = vector.load %arg6[%c0_42, %c0_43] : memref<32x7xf32, #tpu.memory_space<vmem>>, vector<32x7xf32>
    %cst_44 = arith.constant dense<0.000000e+00> : vector<16x7xf32>
    %81 = tpu.matmul %79, %80, %cst_44 {dimension_numbers = #tpu.dot_dimension_numbers<[1], [0], [0], [1], [0, 0, 1, 1], [], []>} : vector<16x32xf32>, vector<32x7xf32>, vector<16x7xf32> -> vector<16x7xf32>
    %c0_45 = arith.constant 0 : index
    %c0_46 = arith.constant 0 : index
    %82 = vector.load %arg7[%c0_45, %c0_46] : memref<1x7xf32, #tpu.memory_space<vmem>>, vector<1x7xf32>
    %83 = vector.broadcast %82 : vector<1x7xf32> to vector<16x7xf32>
    %84 = arith.addf %81, %83 : vector<16x7xf32>
    %85 = vector.extract_strided_slice %84 {offsets = [0, 0], sizes = [16, 3], strides = [1, 1]} : vector<16x7xf32> to vector<16x3xf32>
    %86 = tpu.iota {dimensions = array<i32: 1>} : vector<16x3xi32>
    %c2_i32 = arith.constant 2 : i32
    %87 = vector.broadcast %c2_i32 : i32 to vector<16x3xi32>
    %88 = arith.cmpi eq, %86, %87 : vector<16x3xi32>
    %cst_47 = arith.constant -1.000000e+03 : f32
    %89 = vector.broadcast %cst_47 : f32 to vector<16x3xf32>
    %90 = arith.select %88, %89, %85 : vector<16x3xi1>, vector<16x3xf32>
    %cst_48 = arith.constant dense<0xFF800000> : vector<16xf32>
    %91 = vector.multi_reduction <maximumf>, %90, %cst_48 [1] : vector<16x3xf32> to vector<16xf32>
    %92 = vector.shape_cast %91 : vector<16xf32> to vector<16x1xf32>
    %93 = vector.broadcast %92 : vector<16x1xf32> to vector<16x3xf32>
    %94 = arith.subf %90, %93 : vector<16x3xf32>
    %95 = math.exp %94 : vector<16x3xf32>
    %cst_49 = arith.constant dense<0.000000e+00> : vector<16xf32>
    %96 = vector.multi_reduction <add>, %95, %cst_49 [1] : vector<16x3xf32> to vector<16xf32>
    %97 = vector.shape_cast %96 : vector<16xf32> to vector<16x1xf32>
    %98 = tpu.reciprocal %97 : vector<16x1xf32> -> vector<16x1xf32>
    %99 = vector.broadcast %98 : vector<16x1xf32> to vector<16x3xf32>
    %100 = arith.mulf %95, %99 : vector<16x3xf32>
    %c0_50 = arith.constant 0 : index
    %c0_51 = arith.constant 0 : index
    %101 = vector.load %arg8[%c0_50, %c0_51] : memref<16x7xf32, #tpu.memory_space<vmem>>, vector<16x3xf32>
    tpu.vector_store %arg8[%c0_50, %c0_51], %100 {strides = array<i32>} : memref<16x7xf32, #tpu.memory_space<vmem>>, vector<16x3xf32>,
    %102 = vector.extract_strided_slice %84 {offsets = [0, 3], sizes = [16, 4], strides = [1, 1]} : vector<16x7xf32> to vector<16x4xf32>
    %c0_52 = arith.constant 0 : index
    %c3_53 = arith.constant 3 : index
    %103 = vector.load %arg8[%c0_52, %c3_53] : memref<16x7xf32, #tpu.memory_space<vmem>>, vector<16x4xf32>
    tpu.vector_store %arg8[%c0_52, %c3_53], %102 {strides = array<i32>} : memref<16x7xf32, #tpu.memory_space<vmem>>, vector<16x4xf32>,
    return
  }
  func.func @transform_0(%arg0: i32) -> (i32, i32, i32) {
    %c0_i32 = arith.constant 0 : i32
    %c0_i32_0 = arith.constant 0 : i32
    %c0_i32_1 = arith.constant 0 : i32
    %c0_i32_2 = arith.constant 0 : i32
    return %c0_i32, %c0_i32_0, %c0_i32_1 : i32, i32, i32
  }
  func.func @transform_1(%arg0: i32) -> (i32, i32, i32) {
    %c0_i32 = arith.constant 0 : i32
    %c0_i32_0 = arith.constant 0 : i32
    %c0_i32_1 = arith.constant 0 : i32
    %c0_i32_2 = arith.constant 0 : i32
    return %c0_i32, %c0_i32_0, %c0_i32_1 : i32, i32, i32
  }
  func.func @transform_2(%arg0: i32) -> (i32, i32) {
    %c0_i32 = arith.constant 0 : i32
    %c0_i32_0 = arith.constant 0 : i32
    %c0_i32_1 = arith.constant 0 : i32
    return %c0_i32, %c0_i32_0 : i32, i32
  }
  func.func @transform_3(%arg0: i32) -> (i32, i32) {
    %c0_i32 = arith.constant 0 : i32
    %c0_i32_0 = arith.constant 0 : i32
    %c0_i32_1 = arith.constant 0 : i32
    return %c0_i32, %c0_i32_0 : i32, i32
  }
  func.func @transform_4(%arg0: i32) -> (i32, i32) {
    %c0_i32 = arith.constant 0 : i32
    %c0_i32_0 = arith.constant 0 : i32
    %c0_i32_1 = arith.constant 0 : i32
    return %c0_i32, %c0_i32_0 : i32, i32
  }
  func.func @transform_5(%arg0: i32) -> (i32, i32) {
    %c0_i32 = arith.constant 0 : i32
    %c0_i32_0 = arith.constant 0 : i32
    %c0_i32_1 = arith.constant 0 : i32
    return %c0_i32, %c0_i32_0 : i32, i32
  }
  func.func @transform_6(%arg0: i32) -> (i32, i32) {
    %c0_i32 = arith.constant 0 : i32
    %c0_i32_0 = arith.constant 0 : i32
    %c0_i32_1 = arith.constant 0 : i32
    return %c0_i32, %c0_i32_0 : i32, i32
  }
  func.func @transform_7(%arg0: i32) -> (i32, i32) {
    %c0_i32 = arith.constant 0 : i32
    %c0_i32_0 = arith.constant 0 : i32
    %c0_i32_1 = arith.constant 0 : i32
    return %c0_i32, %c0_i32_0 : i32, i32
  }
  func.func @transform_8(%arg0: i32) -> (i32, i32, i32) {
    %c0_i32 = arith.constant 0 : i32
    %c0_i32_0 = arith.constant 0 : i32
    %c0_i32_1 = arith.constant 0 : i32
    %c0_i32_2 = arith.constant 0 : i32
    return %c0_i32, %c0_i32_0, %c0_i32_1 : i32, i32, i32
  }
}

</mosaic_0001>

<bundles_post_ra>
// kernel: tpu_custom_call.1
= control target key start
LH: loop header
LB: loop body
LE: loop exit
PB: predicated region body
PF: predicated region fallthrough
CT: control target
= control target key end

     0   :  { %vm43_vm0 = vcmask 1043456   ;;  %vm36_vm1 = vcmask 31744   ;;  %s741_s0 = inlined_call_operand.vmem [shape: f32[2,8,4], index: 0, kind: input, shape index: {}]   ;;  %s742_s1 = inlined_call_operand.vmem [shape: f32[1,2,32], index: 1, kind: input, shape index: {}]   ;;  %s743_s2 = inlined_call_operand.vmem [shape: f32[4,32], index: 2, kind: input, shape index: {}]   ;;  %s744_s3 = inlined_call_operand.vmem [shape: f32[32,32], index: 3, kind: input, shape index: {}]   ;;  %s745_s4 = inlined_call_operand.vmem [shape: f32[1,32], index: 4, kind: input, shape index: {}]   ;;  %s746_s5 = inlined_call_operand.vmem [shape: f32[32,7], index: 5, kind: input, shape index: {}]   ;;  %s747_s6 = inlined_call_operand.vmem [shape: f32[1,7], index: 6, kind: input, shape index: {}]   ;;  %s748_s7 = inlined_call_operand.vmem [shape: f32[16,7], index: 7, kind: output, shape index: {0}]   ;;  %s749_s8 = inlined_call_operand.hbm [shape: f32[1,2,32], index: 8, kind: output, shape index: {1}]  }
   0x1   :  { %v31_v0 = vld [vmem:[%s743_s2] sm:$0xf]  ;;  %v73_v1 = vld [vmem:[%s744_s3 + $0x18] sm:$0xff]  ;;  %v72_v3 = vld [vmem:[%s744_s3 + $0x10] sm:$0xff] }
   0x2   :  { %v29_v2 = vld [vmem:[%s741_s0] sm:$0xff]  ;;  %506 = vmatpush.msk.msra.mxu0 %vm43_vm0, %v31_v0  ;;  %91 = vmatpush.msra.mxu1 %v73_v1  ;;  %v71_v4 = vld [vmem:[%s744_s3 + $0x8] sm:$0xff] }
   0x3   :  { %507 = vmatmul.msk.f32.vlgmr.msra.gmra.mxu0 %vm36_vm1, %v29_v2  ;;  %129 = vmatpush.msra.mxu3 %v73_v1 }
   0x4   :  { %92 = vmatpush.msra.mxu1 %v72_v3  ;;  %244 = vmatpush.msra.mxu2 %v73_v1 }
   0x5   :  { %14 = vsyncpa [#allocation4], 0  ;;  %v70_v5 = vld [vmem:[%s744_s3] sm:$0xff]  ;;  %130 = vmatpush.msra.mxu3 %v72_v3  ;;  %322 = vmatpush.msrb.mxu0 %v73_v1  ;;  %vm75_vm2 = vcmask 261120   ;;  %v30_v7 = vld [vmem:[%s741_s0 + $0x8] sm:$0xff]  ;;  %vm107_vm3 = vcmask 253952  }
   0x6   :  { %93 = vmatpush.msra.mxu1 %v71_v4  ;;  %v74_v6 = vld [vmem:[%s742_s1] sm:$0x3]  ;;  %245 = vmatpush.msra.mxu2 %v72_v3  ;;  %vm113_vm4 = vcmask 1041409   ;;  %vm145_vm5 = vcmask 254977   ;;  %vm183_vm6 = vcmask 256002   ;;  %vm222_vm7 = vcmask 257027  }
   0x7   :  { %131 = vmatpush.msra.mxu3 %v71_v4  ;;  %323 = vmatpush.msrb.mxu0 %v72_v3  ;;  %v520_v9 = vld [vmem:[%s745_s4] ss:$0 sm:$0xff]  ;;  %vm261_vm8 = vcmask 258052   ;;  %vm300_vm9 = vcmask 259077   ;;  %vm339_vm10 = vcmask 260102   ;;  %vm378_vm11 = vcmask 261127  }
   0x8   :  { %94 = vmatpush.msra.mxu1 %v70_v5  ;;  %246 = vmatpush.msra.mxu2 %v71_v4  ;;  %vm432_vm13 = vcmask 23552   ;;  %s495_s30 = sshll.u32 %s749_s8, 4  ;;  %s496_s30 = int_to_ptr.hbm [resolvable:$true] %s495_s30 }
   0x9   :  { %509 = vmatmul.msk.f32.vlgmr.msra.gmra.mxu1 %vm75_vm2, %v74_v6  ;;  %132 = vmatpush.msra.mxu3 %v70_v5 }
   0xa   :  { %205 = vmatpush.msrb.mxu1 %v73_v1  ;;  %247 = vmatpush.msra.mxu2 %v70_v5 }
   0xb   :  { %166 = vmatpush.msrb.mxu3 %v73_v1  ;;  %508 = vmatmul.msk.f32.gmra.mxu0 %vm36_vm1, %v30_v7 }
   0xc   :  { %206 = vmatpush.msrb.mxu1 %v72_v3  ;;  %324 = vmatpush.msrb.mxu0 %v71_v4 }
   0xd   :  { %167 = vmatpush.msrb.mxu3 %v72_v3 }
   0xe   :  { %207 = vmatpush.msrb.mxu1 %v71_v4  ;;  %325 = vmatpush.msrb.mxu0 %v70_v5 }
   0xf   :  { %168 = vmatpush.msrb.mxu3 %v71_v4 }
  0x10   :  { %208 = vmatpush.msrb.mxu1 %v70_v5 }
  0x11   :  { %169 = vmatpush.msrb.mxu3 %v70_v5 }
  0x12   :  { %361 = vmatpush.msra.mxu1 %v73_v1 }
  0x14   :  { %362 = vmatpush.msra.mxu1 %v72_v3 }
  0x16   :  { %363 = vmatpush.msra.mxu1 %v71_v4 }
  0x18   :  { %364 = vmatpush.msra.mxu1 %v70_v5 }
  0x80   :  { %v64_v8 = vpop.f32.mrf.mxu0 }
  0x81   :  { %v664_v10 = vadd.f32 %v520_v9, %v64_v8 }
  0x86   :  { %v96_v11 = vpop.f32.mrf.mxu1 }
  0x87   :  { %v100_v12 = vrot.slane %v96_v11, 1  ;;  %v103_v13 = vadd.f32 %v96_v11, %v664_v10 }
  0x88   :  { %v67_v14 = vpop.f32.mrf.mxu0 }
  0x89   :  { %522 = vtanh.f32 %v103_v13  ;;  %v667_v15 = vadd.f32 %v520_v9, %v67_v14 }
  0x8b   :  { %v104_v16 = vadd.f32 %v100_v12, %v667_v15 }
  0x8d   :  { %524 = vtanh.f32 %v104_v16 }
  0x8f   :  { %v523_v17 = vpop.eup %522 }
  0x90   :  { %108 = vst.msk [vmem:[#allocation2] sm:$0x1] %vm107_vm3, %v523_v17 }
  0x93   :  { %v525_v18 = vpop.eup %524 }
  0x94   :  { %109 = vst.msk [vmem:[#allocation2 + $0x8] sm:$0x1] %vm107_vm3, %v525_v18  ;;  %v112_v19 = vrot.slane %v525_v18, 7  ;;  %v392_v18 = vld [vmem:[%s746_s5 + $0x10] sm:$0xff] }
  0x96   :  { %v114_v20 = vsel %vm113_vm4, %v112_v19, %v523_v17  ;;  %v393_v17 = vld [vmem:[%s746_s5 + $0x18] sm:$0xff]  ;;  %v391_v19 = vld [vmem:[%s746_s5 + $0x8] sm:$0xff] }
  0x97   :  { %510 = vmatmul.msk.f32.vlgmr.msra.gmra.mxu3 %vm75_vm2, %v114_v20  ;;  %416 = vmatpush.msrb.mxu2 %v393_v17  ;;  %v390_v20 = vld [vmem:[%s746_s5] sm:$0xff] }
  0x98   :  { %283 = vmatpush.msra.mxu3 %v73_v1 }
  0x99   :  { %417 = vmatpush.msrb.mxu2 %v392_v18 }
  0x9a   :  { %284 = vmatpush.msra.mxu3 %v72_v3 }
  0x9b   :  { %418 = vmatpush.msrb.mxu2 %v391_v19 }
  0x9c   :  { %285 = vmatpush.msra.mxu3 %v71_v4 }
  0x9d   :  { %419 = vmatpush.msrb.mxu2 %v390_v20 }
  0x9e   :  { %286 = vmatpush.msra.mxu3 %v70_v5 }
 0x11a   :  { %v134_v21 = vpop.f32.mrf.mxu3 }
 0x11b   :  { %v138_v22 = vrot.slane %v134_v21, 7  ;;  %v142_v23 = vadd.f32 %v134_v21, %v667_v15 }
 0x11d   :  { %v141_v24 = vadd.f32 %v138_v22, %v664_v10  ;;  %526 = vtanh.f32 %v142_v23 }
 0x11f   :  { %528 = vtanh.f32 %v141_v24 }
 0x123   :  { %v527_v25 = vpop.eup %526 }
 0x124   :  { %147 = vst.msk [vmem:[#allocation2 + $0x8] sm:$0x2] %vm145_vm5, %v527_v25 }
 0x125   :  { %v529_v26 = vpop.eup %528 }
 0x126   :  { %146 = vst.msk [vmem:[#allocation2] sm:$0x2] %vm145_vm5, %v529_v26  ;;  %v150_v27 = vrot.slane %v529_v26, 1 }
 0x128   :  { %v151_v28 = vsel %vm113_vm4, %v527_v25, %v150_v27 }
 0x129   :  { %511 = vmatmul.msk.f32.vlgmr.msrb.gmra.mxu3 %vm75_vm2, %v151_v28 }
 0x1ac   :  { %v171_v29 = vpop.f32.mrf.mxu3 }
 0x1ad   :  { %v175_v30 = vrot.slane %v171_v29, 6  ;;  %v176_v31 = vrot.slane %v171_v29, 7 }
 0x1af   :  { %v179_v32 = vadd.f32 %v175_v30, %v664_v10  ;;  %v180_v33 = vadd.f32 %v176_v31, %v667_v15 }
 0x1b1   :  { %530 = vtanh.f32 %v179_v32 }
 0x1b2   :  { %532 = vtanh.f32 %v180_v33 }
 0x1b7   :  { %v531_v34 = vpop.eup %530 }
 0x1b8   :  { %v533_v35 = vpop.eup %532  ;;  %184 = vst.msk [vmem:[#allocation2] sm:$0x4] %vm183_vm6, %v531_v34  ;;  %v188_v36 = vrot.slane %v531_v34, 2 }
 0x1b9   :  { %185 = vst.msk [vmem:[#allocation2 + $0x8] sm:$0x4] %vm183_vm6, %v533_v35  ;;  %v189_v37 = vrot.slane %v533_v35, 1 }
 0x1bb   :  { %v190_v38 = vsel %vm113_vm4, %v189_v37, %v188_v36 }
 0x1bc   :  { %512 = vmatmul.msk.f32.vlgmr.msrb.gmra.mxu1 %vm75_vm2, %v190_v38 }
 0x239   :  { %v210_v39 = vpop.f32.mrf.mxu1 }
 0x23a   :  { %v214_v40 = vrot.slane %v210_v39, 5  ;;  %v215_v41 = vrot.slane %v210_v39, 6 }
 0x23c   :  { %v218_v42 = vadd.f32 %v214_v40, %v664_v10  ;;  %v219_v43 = vadd.f32 %v215_v41, %v667_v15 }
 0x23e   :  { %534 = vtanh.f32 %v218_v42 }
 0x23f   :  { %536 = vtanh.f32 %v219_v43 }
 0x244   :  { %v535_v44 = vpop.eup %534 }
 0x245   :  { %v537_v45 = vpop.eup %536  ;;  %223 = vst.msk [vmem:[#allocation2] sm:$0x8] %vm222_vm7, %v535_v44  ;;  %v227_v46 = vrot.slane %v535_v44, 3 }
 0x246   :  { %224 = vst.msk [vmem:[#allocation2 + $0x8] sm:$0x8] %vm222_vm7, %v537_v45  ;;  %v228_v47 = vrot.slane %v537_v45, 2 }
 0x248   :  { %v229_v48 = vsel %vm113_vm4, %v228_v47, %v227_v46 }
 0x249   :  { %513 = vmatmul.msk.f32.vlgmr.msra.gmra.mxu2 %vm75_vm2, %v229_v48 }
 0x2cc   :  { %v249_v49 = vpop.f32.mrf.mxu2 }
 0x2cd   :  { %v253_v50 = vrot.slane %v249_v49, 4  ;;  %v254_v51 = vrot.slane %v249_v49, 5 }
 0x2cf   :  { %v257_v52 = vadd.f32 %v253_v50, %v664_v10  ;;  %v258_v53 = vadd.f32 %v254_v51, %v667_v15 }
 0x2d1   :  { %538 = vtanh.f32 %v257_v52 }
 0x2d2   :  { %540 = vtanh.f32 %v258_v53 }
 0x2d7   :  { %v539_v54 = vpop.eup %538 }
 0x2d8   :  { %v541_v55 = vpop.eup %540  ;;  %262 = vst.msk [vmem:[#allocation2] sm:$0x10] %vm261_vm8, %v539_v54  ;;  %v266_v56 = vrot.slane %v539_v54, 4 }
 0x2d9   :  { %263 = vst.msk [vmem:[#allocation2 + $0x8] sm:$0x10] %vm261_vm8, %v541_v55  ;;  %v267_v57 = vrot.slane %v541_v55, 3 }
 0x2db   :  { %v268_v58 = vsel %vm113_vm4, %v267_v57, %v266_v56 }
 0x2dc   :  { %514 = vmatmul.msk.f32.vlgmr.msra.gmra.mxu3 %vm75_vm2, %v268_v58 }
 0x35f   :  { %v288_v59 = vpop.f32.mrf.mxu3 }
 0x360   :  { %v292_v60 = vrot.slane %v288_v59, 3  ;;  %v293_v61 = vrot.slane %v288_v59, 4 }
 0x362   :  { %v296_v62 = vadd.f32 %v292_v60, %v664_v10  ;;  %v297_v63 = vadd.f32 %v293_v61, %v667_v15 }
 0x364   :  { %542 = vtanh.f32 %v296_v62 }
 0x365   :  { %544 = vtanh.f32 %v297_v63 }
 0x36a   :  { %v543_v0 = vpop.eup %542 }
 0x36b   :  { %v545_v1 = vpop.eup %544  ;;  %301 = vst.msk [vmem:[#allocation2] sm:$0x20] %vm300_vm9, %v543_v0  ;;  %v305_v2 = vrot.slane %v543_v0, 5 }
 0x36c   :  { %302 = vst.msk [vmem:[#allocation2 + $0x8] sm:$0x20] %vm300_vm9, %v545_v1  ;;  %v306_v3 = vrot.slane %v545_v1, 4 }
 0x36e   :  { %v307_v4 = vsel %vm113_vm4, %v306_v3, %v305_v2 }
 0x36f   :  { %515 = vmatmul.msk.f32.vlgmr.msrb.gmra.mxu0 %vm75_vm2, %v307_v4 }
 0x3ec   :  { %v327_v5 = vpop.f32.mrf.mxu0 }
 0x3ed   :  { %v331_v6 = vrot.slane %v327_v5, 2  ;;  %v332_v7 = vrot.slane %v327_v5, 3 }
 0x3ef   :  { %v335_v8 = vadd.f32 %v331_v6, %v664_v10  ;;  %v336_v9 = vadd.f32 %v332_v7, %v667_v15 }
 0x3f1   :  { %546 = vtanh.f32 %v335_v8 }
 0x3f2   :  { %548 = vtanh.f32 %v336_v9 }
 0x3f7   :  { %v547_v11 = vpop.eup %546 }
 0x3f8   :  { %v549_v12 = vpop.eup %548  ;;  %340 = vst.msk [vmem:[#allocation2] sm:$0x40] %vm339_vm10, %v547_v11  ;;  %v344_v13 = vrot.slane %v547_v11, 6 }
 0x3f9   :  { %341 = vst.msk [vmem:[#allocation2 + $0x8] sm:$0x40] %vm339_vm10, %v549_v12  ;;  %v345_v14 = vrot.slane %v549_v12, 5 }
 0x3fb   :  { %v346_v16 = vsel %vm113_vm4, %v345_v14, %v344_v13 }
 0x3fc   :  { %516 = vmatmul.msk.f32.vlgmr.msra.gmra.mxu1 %vm75_vm2, %v346_v16 }
 0x479   :  { %v366_v21 = vpop.f32.mrf.mxu1 }
 0x47a   :  { %v370_v22 = vrot.slane %v366_v21, 1  ;;  %v371_v23 = vrot.slane %v366_v21, 2 }
 0x47c   :  { %v374_v24 = vadd.f32 %v370_v22, %v664_v10  ;;  %v375_v25 = vadd.f32 %v371_v23, %v667_v15  ;;  %v427_v10 = vlaneseq  ;;  %v521_v15 = vld [vmem:[%s747_s6] ss:$0 sm:$0xff]  ;;  %s588_s6 = smov [#allocation3]  }
 0x47d   :  { %s493_s27 = sshll.u32 %s588_s6, 4  ;;  %s494_s27 = int_to_ptr.vmem [resolvable:$true] %s493_s27 }
 0x47e   :  { %550 = vtanh.f32 %v374_v24  ;;  %v428_v31 = vand.u32 127, %v427_v10 }
 0x47f   :  { %552 = vtanh.f32 %v375_v25 }
 0x480   :  { %vm429_vm12 = vcmp.eq.s32.totalorder %v428_v31, 2 }
 0x484   :  { %v551_v26 = vpop.eup %550 }
 0x485   :  { %v553_v27 = vpop.eup %552  ;;  %379 = vst.msk [vmem:[#allocation2] sm:$0x80] %vm378_vm11, %v551_v26 }
 0x486   :  { %380 = vst.msk [vmem:[#allocation2 + $0x8] sm:$0x80] %vm378_vm11, %v553_v27  ;;  %v383_v28 = vrot.slane %v553_v27, 7 }
 0x487   :  { %386 = vst.msk [vmem:[#allocation3 - $0x7] sm:$0x80] %vm378_vm11, %v551_v26 }
 0x488   :  { %387 = vst.msk [vmem:[#allocation3 + $0x1] sm:$0x1] %vm107_vm3, %v383_v28 }
 0x489   :  { %498 = dma.vmem_to_hbm [thread:$0]  %s494_s27, 32, %s496_s30, [#allocation4]  }
 0x48c   :  { %v388_v29 = vld [vmem:[#allocation2] sm:$0xff] }
 0x48d   :  { %517 = vmatmul.msk.f32.vlgmr.msrb.gmra.mxu2 %vm75_vm2, %v388_v29  ;;  %v389_v30 = vld [vmem:[#allocation2 + $0x8] sm:$0xff] }
 0x495   :  { %518 = vmatmul.msk.f32.gmra.mxu2 %vm75_vm2, %v389_v30  ;;  %vm483_vm2 = vcmask 56344  }
 0x510   :  { %v421_v32 = vpop.f32.mrf.mxu2 }
 0x511   :  { %v422_v33 = vadd.f32 %v521_v15, %v421_v32 }
 0x513   :  { %v430_v34 = vsel %vm429_vm12, -1000.0, %v422_v33 }
 0x514   :  { %v433_v35 = vsel %vm432_vm13, %v430_v34, -inf }
 0x515   :  { %434 = vmax.xlane.f32.xlu0 %v433_v35 }
 0x518   :  { %v424_v36 = vpop.f32.mrf.mxu2 }
 0x519   :  { %v425_v37 = vadd.f32 %v521_v15, %v424_v36 }
 0x51b   :  { %v431_v38 = vsel %vm429_vm12, -1000.0, %v425_v37 }
 0x51c   :  { %v436_v39 = vsel %vm432_vm13, %v431_v38, -inf }
 0x51d   :  { %437 = vmax.xlane.f32.xlu0 %v436_v39 }
 0x588   :  { %v435_v40 = vpop.xlane.xlu0 %434 }
 0x589   :  { %v439_v41 = vsub.f32 %v430_v34, %v435_v40 }
 0x58b   :  { %v441_v42 = vmul.f32 1.442695, %v439_v41 }
 0x58d   :  { %554 = vpow2.f32 %v441_v42 }
 0x590   :  { %v438_v43 = vpop.xlane.xlu0 %437 }
 0x591   :  { %v440_v44 = vsub.f32 %v431_v38, %v438_v43 }
 0x593   :  { %v555_v45 = vpop.eup %554  ;;  %v443_v46 = vmul.f32 1.442695, %v440_v44 }
 0x594   :  { %v445_v47 = vsel %vm432_vm13, %v555_v45, 0.0 }
 0x595   :  { %556 = vpow2.f32 %v443_v46  ;;  %446 = vadd.xlane.f32.xlu1 %v445_v47 }
 0x59b   :  { %v557_v48 = vpop.eup %556 }
 0x59c   :  { %v448_v49 = vsel %vm432_vm13, %v557_v48, 0.0 }
 0x59d   :  { %449 = vadd.xlane.f32.xlu1 %v448_v49 }
 0x608   :  { %v447_v50 = vpop.xlane.xlu1 %446 }
 0x609   :  { %558 = vrcp.f32 %v447_v50  ;;  %v462_v55 = vand.u32 2147483648, %v447_v50  ;;  %v460_v57 = vand.u32 2147483647, %v447_v50  ;;  %vm456_vm15 = vweird.f32 %v447_v50 }
 0x60b   :  { %v463_v60 = vor.u32 1.1754944e-38, %v462_v55  ;;  %vm461_vm1 = vcmp.eq.f32.partialorder %v460_v57, 8.507059e+37 }
 0x60f   :  { %v559_v51 = vpop.eup %558 }
 0x610   :  { %v452_v52 = vmul.f32 %v559_v51, %v447_v50  ;;  %v450_v53 = vpop.xlane.xlu1 %449  ;;  %vm457_vm14 = vweird.f32 %v559_v51 }
 0x611   :  { %560 = vrcp.f32 %v450_v53  ;;  %vm458_vm0 = vmor %vm456_vm15, %vm457_vm14  ;;  %v476_v2 = vand.u32 2147483648, %v450_v53  ;;  %v474_v4 = vand.u32 2147483647, %v450_v53  ;;  %vm470_vm4 = vweird.f32 %v450_v53 }
 0x612   :  { %v453_v54 = vsub.f32 1.0, %v452_v52 }
 0x613   :  { %v477_v6 = vor.u32 1.1754944e-38, %v476_v2  ;;  %vm475_vm6 = vcmp.eq.f32.partialorder %v474_v4, 8.507059e+37 }
 0x614   :  { %v454_v56 = vmul.f32 %v559_v51, %v453_v54 }
 0x616   :  { %v455_v58 = vadd.f32 %v559_v51, %v454_v56 }
 0x617   :  { %v561_v59 = vpop.eup %560 }
 0x618   :  { %v459_v61 = vsel %vm458_vm0, %v559_v51, %v455_v58  ;;  %v466_v62 = vmul.f32 %v561_v59, %v450_v53  ;;  %vm471_vm3 = vweird.f32 %v561_v59 }
 0x619   :  { %v464_v63 = vsel %vm461_vm1, %v463_v60, %v459_v61  ;;  %vm472_vm5 = vmor %vm470_vm4, %vm471_vm3 }
 0x61a   :  { %v479_v0 = vmul.f32 %v555_v45, %v464_v63  ;;  %v467_v1 = vsub.f32 1.0, %v466_v62 }
 0x61c   :  { %481 = vst.msk [vmem:[%s748_s7] sm:$0xff] %vm432_vm13, %v479_v0  ;;  %v468_v3 = vmul.f32 %v561_v59, %v467_v1 }
 0x61d   :  { %484 = vst.msk [vmem:[%s748_s7] sm:$0xff] %vm483_vm2, %v422_v33 }
 0x61e   :  { %v469_v5 = vadd.f32 %v561_v59, %v468_v3 }
 0x620   :  { %v473_v7 = vsel %vm472_vm5, %v561_v59, %v469_v5 }
 0x621   :  { %v478_v8 = vsel %vm475_vm6, %v477_v6, %v473_v7 }
 0x622   :  { %v480_v9 = vmul.f32 %v557_v48, %v478_v8 }
 0x624   :  { %482 = vst.msk [vmem:[%s748_s7 + $0x8] sm:$0xff] %vm432_vm13, %v480_v9 }
 0x625   :  { %485 = vst.msk [vmem:[%s748_s7 + $0x8] sm:$0xff] %vm483_vm2, %v425_v37 }
 0x626   :  { %586 = dma.done.wait [#allocation4], 32  }
 0x627   :  { %587 = vsyncadd [#allocation4], 4294967264 }
 0x628   :  { %505 = vsyncpa [#allocation4], 1 }

</bundles_post_ra>
